<compile_context>
chip_gen: v7x
topology: tpu7x:2x2x1
jax: 0.10.0
libtpu: 0.0.40
codegen_flags: <defaults>
</compile_context>

<pallas_src>
import functools

import jax
import jax.numpy as jnp
from jax.experimental import pallas as pl
from jax.experimental.pallas import tpu as pltpu

H = 32               # num_hidden
PACK = 4             # edges packed per 128-lane row
LANES = PACK * H     # 128
BN_EPS = 1e-5
MAX_TE_PACK = 1024   # max packed rows per grid step (= 4096 edges)
MIN_TE_PACK = 16     # bf16 sublane packing -> (16, 128) minimum tile


def _round_up(x, m):
    return ((x + m - 1) // m) * m


def _cdiv(a, b):
    return -(-a // b)


def _gelu_tanh(x):
    # tanh-form GELU: 0.5*x*(1 + tanh(sqrt(2/pi)*(x + 0.044715*x^3))).
    # Max abs error vs exact erf-GELU ~3e-4; tanh goes to the EUP slot.
    c = 0.7978845608028654
    return 0.5 * x * (1.0 + jnp.tanh(c * (x + 0.044715 * x * x * x)))


def update_edge_kernel(hs_ref, he_ref, hd_ref,
                       w1_ref, w2_ref, w3_ref, vec_ref, out_ref):
    hs = hs_ref[...]          # bf16 [TE, 128] : 4 src-node feature vectors/row
    he = he_ref[...]          # bf16 [TE, 128] : 4 edge feature vectors/row
    hd = hd_ref[...]          # bf16 [TE, 128] : 4 dst-node feature vectors/row

    b1 = vec_ref[0:1, :]      # f32 [1, 128]
    b2 = vec_ref[1:2, :]
    b3 = vec_ref[2:3, :]      # BN-folded bias
    s = vec_ref[3:4, :]       # BN-folded scale  gamma / sqrt(var + eps)

    # Fused Linear(3H -> H): lane-concat then a single K=384 block-diag matmul.
    x0 = jnp.concatenate([hs, he, hd], axis=-1)                    # bf16 [TE,384]
    x = jnp.dot(x0, w1_ref[...], preferred_element_type=jnp.float32) + b1
    x = _gelu_tanh(x)                                              # f32
    x = jnp.dot(x.astype(jnp.bfloat16), w2_ref[...],
                preferred_element_type=jnp.float32) + b2
    x = _gelu_tanh(x)
    x = jnp.dot(x.astype(jnp.bfloat16), w3_ref[...],
                preferred_element_type=jnp.float32) + b3

    # residual + folded eval-mode BatchNorm:  out = h_E * s + (mlp, BN-folded)
    out_ref[...] = (he.astype(jnp.float32) * s + x).astype(out_ref.dtype)


def pack_update_edge_params(params):
    """One-time weight prep: BN fold, block-diagonalize, bf16 cast, bias tile."""
    Hh = params["b1"].shape[0]
    w1t = params["w1"].T.astype(jnp.float32)     # [3H, H]
    w2t = params["w2"].T.astype(jnp.float32)     # [H, H]

    s = params["gamma"] * jax.lax.rsqrt(params["var"] + BN_EPS)     # [H]
    w3p = params["w3"].T.astype(jnp.float32) * s[None, :]           # [H, H]
    b3p = (params["b3"] - params["mean"]) * s + params["beta"]      # [H]

    eye = jnp.eye(PACK, dtype=jnp.float32)
    blk = lambda w: jnp.kron(eye, w)             # [K,H] -> [PACK*K, PACK*H]

    w1a, w1b, w1c = w1t[:Hh], w1t[Hh:2 * Hh], w1t[2 * Hh:]
    w1_blk = jnp.concatenate([blk(w1a), blk(w1b), blk(w1c)],
                             axis=0).astype(jnp.bfloat16)           # [384, 128]
    w2_blk = blk(w2t).astype(jnp.bfloat16)                          # [128, 128]
    w3_blk = blk(w3p).astype(jnp.bfloat16)                          # [128, 128]

    row = lambda v: jnp.tile(v.astype(jnp.float32).reshape(1, Hh),
                             (1, PACK)).reshape(PACK * Hh)
    vecs = jnp.stack([row(params["b1"]), row(params["b2"]), row(b3p), row(s)]
                     + [jnp.zeros((PACK * Hh,), jnp.float32)] * 4,
                     axis=0)                                        # (8, 128) f32
    return dict(w1=w1_blk, w2=w2_blk, w3=w3_blk, vecs=vecs)


@functools.partial(jax.jit, static_argnames=("max_te_pack",))
def update_edge_pallas(h_V, h_E, T_ts, edge_idx, batch_id, packed,
                       *, max_te_pack=MAX_TE_PACK):
    # T_ts and batch_id are unused by the PyTorch forward; kept for parity.
    del T_ts, batch_id
    src_idx = edge_idx[0]
    dst_idx = edge_idx[1]

    E, Hh = h_E.shape
    L = PACK * Hh                                # 128 lanes

    # --- balanced lane-dense tiling (>= 2 grid steps for v7x megacore) -------
    rows = _cdiv(E, PACK)
    n_tiles = max(2, _cdiv(rows, max_te_pack))
    te_pack = _round_up(_cdiv(rows, n_tiles), MIN_TE_PACK)
    rows_pad = _round_up(rows, te_pack)
    e_pad = rows_pad * PACK
    grid = rows_pad // te_pack

    # --- bf16 streams, padded via cheap index vectors --------------------------
    # h_E: pad + pack (only remaining pad copy; bounded by balanced tiles).
    he_p = jnp.pad(h_E.astype(jnp.bfloat16),
                   ((0, e_pad - E), (0, 0))).reshape(rows_pad, L)
    # nodes: cast h_V to bf16 first and pad the index vectors, so the gather
    # emits padded bf16 arrays directly and the pack reshape is free.
    hv16 = h_V.astype(jnp.bfloat16)
    src_p = jnp.pad(src_idx, (0, e_pad - E))
    dst_p = jnp.pad(dst_idx, (0, e_pad - E))
    hs_p = hv16[src_p].reshape(rows_pad, L)
    hd_p = hv16[dst_p].reshape(rows_pad, L)

    # --- specs -----------------------------------------------------------------
    tile_spec = pl.BlockSpec((te_pack, L), lambda i: (i, 0))
    w1_spec = pl.BlockSpec((3 * L, L), lambda i: (0, 0))
    mat_spec = pl.BlockSpec((L, L), lambda i: (0, 0))
    vec_spec = pl.BlockSpec((8, L), lambda i: (0, 0))

    grid_spec = pltpu.PrefetchScalarGridSpec(
        num_scalar_prefetch=0,
        grid=(grid,),
        in_specs=[tile_spec, tile_spec, tile_spec,   # h_src, h_E, h_dst (bf16)
                  w1_spec, mat_spec, mat_spec,       # W1 (fused blkdiag), W2, W3'
                  vec_spec],                         # [b1; b2; b3'; s] (f32)
        out_specs=pl.BlockSpec((te_pack, L), lambda i: (i, 0)),
    )

    flops = rows_pad * 2 * L * (3 * L + L + L)          # 5 LxL-equiv matmuls/row
    transcendentals = rows_pad * L * 2                  # 2 tanh per element
    bytes_accessed = (rows_pad * L * (3 * 2 + 4)        # 3 bf16 in + 1 f32 out
                      + (3 * L + 2 * L) * L * 2 + 8 * L * 4)

    out_p = pl.pallas_call(
        update_edge_kernel,
        out_shape=jax.ShapeDtypeStruct((rows_pad, L), jnp.float32),
        grid_spec=grid_spec,
        compiler_params=pltpu.CompilerParams(
            dimension_semantics=("parallel",)),
        cost_estimate=pl.CostEstimate(
            flops=flops,
            transcendentals=transcendentals,
            bytes_accessed=bytes_accessed),
    )(hs_p, he_p, hd_p, packed["w1"], packed["w2"], packed["w3"], packed["vecs"])

    return out_p.reshape(e_pad, Hh)[:E]


def update_edge_reference(h_V, h_E, edge_idx, params):
    # Pure-JAX f32 reference (eval-mode semantics of the PyTorch module).
    src_idx, dst_idx = edge_idx[0], edge_idx[1]
    h_EV = jnp.concatenate([h_V[src_idx], h_E, h_V[dst_idx]], axis=-1)
    x = h_EV @ params["w1"].T + params["b1"]
    x = jax.nn.gelu(x, approximate=False)
    x = x @ params["w2"].T + params["b2"]
    x = jax.nn.gelu(x, approximate=False)
    x = x @ params["w3"].T + params["b3"]
    y = h_E + x
    y = (y - params["mean"]) / jnp.sqrt(params["var"] + BN_EPS)
    return y * params["gamma"] + params["beta"]


if __name__ == "__main__":
    key = jax.random.PRNGKey(0)
    keys = jax.random.split(key, 12)

    N, E = 16, 128  # nodes, edges
    h_V = jax.random.normal(keys[0], (N, H), jnp.float32)
    h_E = jax.random.normal(keys[1], (E, H), jnp.float32)
    src = jax.random.randint(keys[2], (E,), 0, N)
    dst = jax.random.randint(keys[3], (E,), 0, N)
    edge_idx = jnp.stack([src, dst])          # [2, E]
    T_ts = jnp.zeros((E, 8), jnp.float32)     # unused by forward
    batch_id = jnp.zeros((N,), jnp.int32)     # unused by forward

    def init_linear(k, fan_in, fan_out):
        k1, k2 = jax.random.split(k)
        bound = 1.0 / (fan_in ** 0.5)
        w = jax.random.uniform(k1, (fan_out, fan_in), jnp.float32, -bound, bound)
        b = jax.random.uniform(k2, (fan_out,), jnp.float32, -bound, bound)
        return w, b

    w1, b1 = init_linear(keys[4], 3 * H, H)   # MLP layer 1 (3H -> H)
    w2, b2 = init_linear(keys[5], H, H)       # MLP layer 2 (H -> H)
    w3, b3 = init_linear(keys[6], H, H)       # MLP layer 3 (H -> H)
    params = dict(
        w1=w1, b1=b1, w2=w2, b2=b2, w3=w3, b3=b3,
        gamma=jax.random.uniform(keys[7], (H,), jnp.float32, 0.5, 1.5),
        beta=jax.random.normal(keys[8], (H,), jnp.float32) * 0.1,
        mean=jax.random.normal(keys[9], (H,), jnp.float32) * 0.1,
        var=jax.random.uniform(keys[10], (H,), jnp.float32, 0.5, 1.5),
    )
    # NOTE: self.pred_quat is defined in __init__ but never used in forward().

    packed = pack_update_edge_params(params)   # one-time weight prep
    packed = jax.tree_util.tree_map(jax.block_until_ready, packed)

    out = update_edge_pallas(h_V, h_E, T_ts, edge_idx, batch_id, packed)
    out = jax.block_until_ready(out)

    ref = update_edge_reference(h_V, h_E, edge_idx, params)
    assert out.shape == (E, H) and out.dtype == jnp.float32
    # Tolerance reflects bf16 activation/weight streaming + tanh-form GELU.
    assert jnp.allclose(out, ref, atol=2e-2, rtol=2e-2), \
        f"max err {jnp.max(jnp.abs(out - ref))}"
    print("KERNEL_OK")
</pallas_src>

<mosaic_0001>
module attributes {stable_mosaic.version = 11 : i64} {
  func.func @update_edge_kernel(%arg0: i32, %arg1: memref<16x128xbf16, #tpu.memory_space<vmem>>, %arg2: memref<16x128xbf16, #tpu.memory_space<vmem>>, %arg3: memref<16x128xbf16, #tpu.memory_space<vmem>>, %arg4: memref<384x128xbf16, #tpu.memory_space<vmem>>, %arg5: memref<128x128xbf16, #tpu.memory_space<vmem>>, %arg6: memref<128x128xbf16, #tpu.memory_space<vmem>>, %arg7: memref<8x128xf32, #tpu.memory_space<vmem>>, %arg8: memref<16x128xf32, #tpu.memory_space<vmem>>) attributes {dimension_semantics = [#tpu.dimension_semantics<parallel>], iteration_bounds = array<i64: 2>, scalar_prefetch = 0 : i64, scratch_operands = 0 : i64, tpu.core_type = #tpu.core_type<tc>, window_params = [{transform_indices = @transform_0, window_bounds = array<i64: 16, 128>}, {transform_indices = @transform_1, window_bounds = array<i64: 16, 128>}, {transform_indices = @transform_2, window_bounds = array<i64: 16, 128>}, {pipeline_mode = #tpu.pipeline_mode<synchronous>, transform_indices = @transform_3, window_bounds = array<i64: 384, 128>}, {pipeline_mode = #tpu.pipeline_mode<synchronous>, transform_indices = @transform_4, window_bounds = array<i64: 128, 128>}, {pipeline_mode = #tpu.pipeline_mode<synchronous>, transform_indices = @transform_5, window_bounds = array<i64: 128, 128>}, {pipeline_mode = #tpu.pipeline_mode<synchronous>, transform_indices = @transform_6, window_bounds = array<i64: 8, 128>}, {transform_indices = @transform_7, window_bounds = array<i64: 16, 128>}]} {
    %c0 = arith.constant 0 : index
    %c0_0 = arith.constant 0 : index
    %0 = vector.load %arg1[%c0, %c0_0] : memref<16x128xbf16, #tpu.memory_space<vmem>>, vector<16x128xbf16>
    %c0_1 = arith.constant 0 : index
    %c0_2 = arith.constant 0 : index
    %1 = vector.load %arg2[%c0_1, %c0_2] : memref<16x128xbf16, #tpu.memory_space<vmem>>, vector<16x128xbf16>
    %c0_3 = arith.constant 0 : index
    %c0_4 = arith.constant 0 : index
    %2 = vector.load %arg3[%c0_3, %c0_4] : memref<16x128xbf16, #tpu.memory_space<vmem>>, vector<16x128xbf16>
    %c0_5 = arith.constant 0 : index
    %c0_6 = arith.constant 0 : index
    %3 = vector.load %arg7[%c0_5, %c0_6] : memref<8x128xf32, #tpu.memory_space<vmem>>, vector<1x128xf32>
    %c1 = arith.constant 1 : index
    %c0_7 = arith.constant 0 : index
    %4 = vector.load %arg7[%c1, %c0_7] : memref<8x128xf32, #tpu.memory_space<vmem>>, vector<1x128xf32>
    %c2 = arith.constant 2 : index
    %c0_8 = arith.constant 0 : index
    %5 = vector.load %arg7[%c2, %c0_8] : memref<8x128xf32, #tpu.memory_space<vmem>>, vector<1x128xf32>
    %c3 = arith.constant 3 : index
    %c0_9 = arith.constant 0 : index
    %6 = vector.load %arg7[%c3, %c0_9] : memref<8x128xf32, #tpu.memory_space<vmem>>, vector<1x128xf32>
    %7 = tpu.concatenate %0, %1, %2 in 1 : vector<16x128xbf16>, vector<16x128xbf16>, vector<16x128xbf16> -> vector<16x384xbf16>
    %c0_10 = arith.constant 0 : index
    %c0_11 = arith.constant 0 : index
    %8 = vector.load %arg4[%c0_10, %c0_11] : memref<384x128xbf16, #tpu.memory_space<vmem>>, vector<384x128xbf16>
    %cst = arith.constant dense<0.000000e+00> : vector<16x128xf32>
    %9 = tpu.matmul %7, %8, %cst {dimension_numbers = #tpu.dot_dimension_numbers<[1], [0], [0], [1], [0, 0, 1, 1], [], []>} : vector<16x384xbf16>, vector<384x128xbf16>, vector<16x128xf32> -> vector<16x128xf32>
    %10 = vector.broadcast %3 : vector<1x128xf32> to vector<16x128xf32>
    %11 = arith.addf %9, %10 : vector<16x128xf32>
    %cst_12 = arith.constant 5.000000e-01 : f32
    %12 = vector.broadcast %cst_12 : f32 to vector<16x128xf32>
    %13 = arith.mulf %12, %11 : vector<16x128xf32>
    %cst_13 = arith.constant 4.471500e-02 : f32
    %14 = vector.broadcast %cst_13 : f32 to vector<16x128xf32>
    %15 = arith.mulf %14, %11 : vector<16x128xf32>
    %16 = arith.mulf %15, %11 : vector<16x128xf32>
    %17 = arith.mulf %16, %11 : vector<16x128xf32>
    %18 = arith.addf %11, %17 : vector<16x128xf32>
    %cst_14 = arith.constant 0.797884583 : f32
    %19 = vector.broadcast %cst_14 : f32 to vector<16x128xf32>
    %20 = arith.mulf %19, %18 : vector<16x128xf32>
    %21 = math.tanh %20 : vector<16x128xf32>
    %cst_15 = arith.constant 1.000000e+00 : f32
    %22 = vector.broadcast %cst_15 : f32 to vector<16x128xf32>
    %23 = arith.addf %22, %21 : vector<16x128xf32>
    %24 = arith.mulf %13, %23 : vector<16x128xf32>
    %25 = arith.truncf %24 : vector<16x128xf32> to vector<16x128xbf16>
    %c0_16 = arith.constant 0 : index
    %c0_17 = arith.constant 0 : index
    %26 = vector.load %arg5[%c0_16, %c0_17] : memref<128x128xbf16, #tpu.memory_space<vmem>>, vector<128x128xbf16>
    %cst_18 = arith.constant dense<0.000000e+00> : vector<16x128xf32>
    %27 = tpu.matmul %25, %26, %cst_18 {dimension_numbers = #tpu.dot_dimension_numbers<[1], [0], [0], [1], [0, 0, 1, 1], [], []>} : vector<16x128xbf16>, vector<128x128xbf16>, vector<16x128xf32> -> vector<16x128xf32>
    %28 = vector.broadcast %4 : vector<1x128xf32> to vector<16x128xf32>
    %29 = arith.addf %27, %28 : vector<16x128xf32>
    %cst_19 = arith.constant 5.000000e-01 : f32
    %30 = vector.broadcast %cst_19 : f32 to vector<16x128xf32>
    %31 = arith.mulf %30, %29 : vector<16x128xf32>
    %cst_20 = arith.constant 4.471500e-02 : f32
    %32 = vector.broadcast %cst_20 : f32 to vector<16x128xf32>
    %33 = arith.mulf %32, %29 : vector<16x128xf32>
    %34 = arith.mulf %33, %29 : vector<16x128xf32>
    %35 = arith.mulf %34, %29 : vector<16x128xf32>
    %36 = arith.addf %29, %35 : vector<16x128xf32>
    %cst_21 = arith.constant 0.797884583 : f32
    %37 = vector.broadcast %cst_21 : f32 to vector<16x128xf32>
    %38 = arith.mulf %37, %36 : vector<16x128xf32>
    %39 = math.tanh %38 : vector<16x128xf32>
    %cst_22 = arith.constant 1.000000e+00 : f32
    %40 = vector.broadcast %cst_22 : f32 to vector<16x128xf32>
    %41 = arith.addf %40, %39 : vector<16x128xf32>
    %42 = arith.mulf %31, %41 : vector<16x128xf32>
    %43 = arith.truncf %42 : vector<16x128xf32> to vector<16x128xbf16>
    %c0_23 = arith.constant 0 : index
    %c0_24 = arith.constant 0 : index
    %44 = vector.load %arg6[%c0_23, %c0_24] : memref<128x128xbf16, #tpu.memory_space<vmem>>, vector<128x128xbf16>
    %cst_25 = arith.constant dense<0.000000e+00> : vector<16x128xf32>
    %45 = tpu.matmul %43, %44, %cst_25 {dimension_numbers = #tpu.dot_dimension_numbers<[1], [0], [0], [1], [0, 0, 1, 1], [], []>} : vector<16x128xbf16>, vector<128x128xbf16>, vector<16x128xf32> -> vector<16x128xf32>
    %46 = vector.broadcast %5 : vector<1x128xf32> to vector<16x128xf32>
    %47 = arith.addf %45, %46 : vector<16x128xf32>
    %48 = arith.extf %1 : vector<16x128xbf16> to vector<16x128xf32>
    %49 = vector.broadcast %6 : vector<1x128xf32> to vector<16x128xf32>
    %50 = arith.mulf %48, %49 : vector<16x128xf32>
    %51 = arith.addf %50, %47 : vector<16x128xf32>
    %c0_26 = arith.constant 0 : index
    %c0_27 = arith.constant 0 : index
    %52 = vector.load %arg8[%c0_26, %c0_27] : memref<16x128xf32, #tpu.memory_space<vmem>>, vector<16x128xf32>
    tpu.vector_store %arg8[%c0_26, %c0_27], %51 {strides = array<i32>} : memref<16x128xf32, #tpu.memory_space<vmem>>, vector<16x128xf32>,
    return
  }
  func.func @transform_0(%arg0: i32) -> (i32, i32) {
    %c0_i32 = arith.constant 0 : i32
    %c0_i32_0 = arith.constant 0 : i32
    return %arg0, %c0_i32 : i32, i32
  }
  func.func @transform_1(%arg0: i32) -> (i32, i32) {
    %c0_i32 = arith.constant 0 : i32
    %c0_i32_0 = arith.constant 0 : i32
    return %arg0, %c0_i32 : i32, i32
  }
  func.func @transform_2(%arg0: i32) -> (i32, i32) {
    %c0_i32 = arith.constant 0 : i32
    %c0_i32_0 = arith.constant 0 : i32
    return %arg0, %c0_i32 : i32, i32
  }
  func.func @transform_3(%arg0: i32) -> (i32, i32) {
    %c0_i32 = arith.constant 0 : i32
    %c0_i32_0 = arith.constant 0 : i32
    %c0_i32_1 = arith.constant 0 : i32
    return %c0_i32, %c0_i32_0 : i32, i32
  }
  func.func @transform_4(%arg0: i32) -> (i32, i32) {
    %c0_i32 = arith.constant 0 : i32
    %c0_i32_0 = arith.constant 0 : i32
    %c0_i32_1 = arith.constant 0 : i32
    return %c0_i32, %c0_i32_0 : i32, i32
  }
  func.func @transform_5(%arg0: i32) -> (i32, i32) {
    %c0_i32 = arith.constant 0 : i32
    %c0_i32_0 = arith.constant 0 : i32
    %c0_i32_1 = arith.constant 0 : i32
    return %c0_i32, %c0_i32_0 : i32, i32
  }
  func.func @transform_6(%arg0: i32) -> (i32, i32) {
    %c0_i32 = arith.constant 0 : i32
    %c0_i32_0 = arith.constant 0 : i32
    %c0_i32_1 = arith.constant 0 : i32
    return %c0_i32, %c0_i32_0 : i32, i32
  }
  func.func @transform_7(%arg0: i32) -> (i32, i32) {
    %c0_i32 = arith.constant 0 : i32
    %c0_i32_0 = arith.constant 0 : i32
    return %arg0, %c0_i32 : i32, i32
  }
}

</mosaic_0001>

<bundles_post_ra>
// kernel: update_edge_pallas.1
= control target key start
LH: loop header
LB: loop body
LE: loop exit
PB: predicated region body
PF: predicated region fallthrough
CT: control target
= control target key end

     0   :  { %s1264_s24 = smov 0   ;;  %s1458_s0 = inlined_call_operand.vmem [shape: bf16[32,128], index: 0, kind: input, shape index: {}]   ;;  %s1459_s1 = inlined_call_operand.vmem [shape: bf16[32,128], index: 1, kind: input, shape index: {}]   ;;  %s1460_s2 = inlined_call_operand.vmem [shape: bf16[32,128], index: 2, kind: input, shape index: {}]   ;;  %s1461_s3 = inlined_call_operand.vmem [shape: bf16[384,128], index: 3, kind: input, shape index: {}]   ;;  %s1462_s4 = inlined_call_operand.vmem [shape: bf16[128,128], index: 4, kind: input, shape index: {}]   ;;  %s1463_s5 = inlined_call_operand.vmem [shape: bf16[128,128], index: 5, kind: input, shape index: {}]   ;;  %s1464_s6 = inlined_call_operand.vmem [shape: f32[8,128], index: 6, kind: input, shape index: {}]   ;;  %s1465_s7 = inlined_call_operand.vmem [shape: f32[32,128], index: 7, kind: output, shape index: {}]  }
   0x1 LB: > { %s981_s25 = sadd.s32 4294967295, %s1220_s24   ;;  %p985_p0 = scmp.ge.s32.totalorder %s1220_s24, 1  ;;  %s1220_s24 = sphi %s1264_s24, %s17_s24  }
   0x2   : > { %p260_p1 = scmp.lt.s32.totalorder %s1220_s24, 3 }
   0x4   : > { %p261_p2 = pnand %p985_p0, %p260_p1 }
   0x5   : > { %v1162_v0 = vld [vmem:[%s1461_s3 + $0x40] sm:$0xff] (!%p261_p2)   ;;  %v1222_v2 = vmov (!%p261_p2), 0.0   ;;  %v1165_v4 = vld [vmem:[%s1461_s3 + $0x48] sm:$0xff] (!%p261_p2)   ;;  %vm1223_vm0 = vmmov (!%p261_p2), 0   ;;  %v1168_v7 = vld [vmem:[%s1461_s3 + $0x50] sm:$0xff] (!%p261_p2)   ;;  %s986_s17 = sshll.u32 (!%p261_p2), %s981_s25, 1 }
   0x6   : > { %264 = sbr.rel (%p261_p2) target bundleno = 748 (0x2ec), region = 48  ;;  %v1163_v1 = vld [vmem:[%s1461_s3] sm:$0xff] (!%p261_p2)   ;;  %1092 = vmatprep.subr.bf16.mxu1 (!%p261_p2), %v1222_v2  ;;  %1043 = vmatprep.subr.bf16.mxu0 (!%p261_p2), %v1162_v0  ;;  %v1166_v5 = vld [vmem:[%s1461_s3 + $0x8] sm:$0xff] (!%p261_p2)   ;;  %v1169_v8 = vld [vmem:[%s1461_s3 + $0x10] sm:$0xff] (!%p261_p2)   ;;  %p303_p3 = scmp.lt.s32.totalorder (!%p261_p2), %s986_s17, 3 }
   0x7   : > { %v1164_v3 = vld [vmem:[%s1461_s3 + $0x80] sm:$0xff] (!%p261_p2)   ;;  %1044 = vmatpush3.bf16.msra.mxu0 (!%p261_p2), %v1163_v1  ;;  %1108 = vmatprep.mubr.msk.bf16.mxu1 (!%p261_p2), %vm1223_vm0, %v1222_v2  ;;  %v1167_v6 = vld [vmem:[%s1461_s3 + $0x88] sm:$0xff] (!%p261_p2)   ;;  %v1170_v9 = vld [vmem:[%s1461_s3 + $0x90] sm:$0xff] (!%p261_p2)  }
   0x8   : > { %1093 = vmatpush3.bf16.msra.mxu1 (!%p261_p2), %v1164_v3  ;;  %1045 = vmatprep.subr.bf16.mxu0 (!%p261_p2), %v1165_v4  ;;  %v1171_v10 = vld [vmem:[%s1461_s3 + $0x58] sm:$0xff] (!%p261_p2)   ;;  %v1174_v13 = vld [vmem:[%s1461_s3 + $0x60] sm:$0xff] (!%p261_p2)   ;;  %v1177_v16 = vld [vmem:[%s1461_s3 + $0x68] sm:$0xff] (!%p261_p2)  }
   0x9   : > { %1094 = vmatprep.subr.bf16.mxu1 (!%p261_p2), %v1222_v2  ;;  %v1172_v11 = vld [vmem:[%s1461_s3 + $0x18] sm:$0xff] (!%p261_p2)   ;;  %v1175_v14 = vld [vmem:[%s1461_s3 + $0x20] sm:$0xff] (!%p261_p2)   ;;  %v1178_v17 = vld [vmem:[%s1461_s3 + $0x28] sm:$0xff] (!%p261_p2)  }
   0xa   : > { %v1173_v12 = vld [vmem:[%s1461_s3 + $0x98] sm:$0xff] (!%p261_p2)   ;;  %v1176_v15 = vld [vmem:[%s1461_s3 + $0xa0] sm:$0xff] (!%p261_p2)   ;;  %v1179_v18 = vld [vmem:[%s1461_s3 + $0xa8] sm:$0xff] (!%p261_p2)  }
   0xb   : > { %1046 = vmatpush3.bf16.msra.mxu0 (!%p261_p2), %v1166_v5  ;;  %v1180_v19 = vld [vmem:[%s1461_s3 + $0x70] sm:$0xff] (!%p261_p2)   ;;  %v1183_v23 = vld [vmem:[%s1461_s3 + $0x78] sm:$0xff] (!%p261_p2)   ;;  %v1189_v28 = vld [vmem:[%s1462_s4] sm:$0xff] (!%p261_p2)  }
   0xc   : > { %1095 = vmatpush3.bf16.msra.mxu1 (!%p261_p2), %v1167_v6  ;;  %1047 = vmatprep.subr.bf16.mxu0 (!%p261_p2), %v1168_v7  ;;  %v1181_v20 = vld [vmem:[%s1461_s3 + $0x30] sm:$0xff] (!%p261_p2)   ;;  %v1184_v24 = vld [vmem:[%s1461_s3 + $0x38] sm:$0xff] (!%p261_p2)   ;;  %v1190_v29 = vld [vmem:[%s1462_s4 + $0x8] sm:$0xff] (!%p261_p2)  }
   0xd   : > { %1096 = vmatprep.subr.bf16.mxu1 %v1222_v2  ;;  %s1467_s17 = smov (!%p303_p3, %s986_s17), 3  ;;  %v1182_v21 = vld [vmem:[%s1461_s3 + $0xb0] sm:$0xff]   ;;  %v1186_v25 = vld [vmem:[%s1461_s3 + $0xb8] sm:$0xff]   ;;  %v1193_v32 = vld [vmem:[%s1462_s4 + $0x20] sm:$0xff]  }
   0xe   : > { %s987_s14 = sshll.u32 %s1467_s17, 2  ;;  %v1191_v30 = vld [vmem:[%s1462_s4 + $0x10] sm:$0xff]   ;;  %v1192_v31 = vld [vmem:[%s1462_s4 + $0x18] sm:$0xff]   ;;  %v1194_v33 = vld [vmem:[%s1462_s4 + $0x28] sm:$0xff]   ;;  %s993_s19 = sshll.u32 %s1467_s17, 3 }
   0xf   : > { %1048 = vmatpush3.bf16.msra.mxu0 %v1169_v8  ;;  %s312_s26 = scalar_lea.vmem %s1459_s1, %s987_s14  ;;  %s306_s9 = scalar_lea.vmem %s1458_s0, %s987_s14  ;;  %v1195_v34 = vld [vmem:[%s1462_s4 + $0x30] sm:$0xff]   ;;  %v1196_v35 = vld [vmem:[%s1462_s4 + $0x38] sm:$0xff]   ;;  %v997_v38 = vld [vmem:[%s1464_s6] ss:$0 sm:$0xff] }
  0x10   : > { %1097 = vmatpush3.bf16.msra.mxu1 %v1170_v9  ;;  %1049 = vmatprep.subr.bf16.mxu0 %v1171_v10  ;;  %v1349_v22 = vld [vmem:[%s312_s26] sm:$0xff]   ;;  %s318_s15 = scalar_lea.vmem %s1460_s2, %s987_s14  ;;  %v1198_v8 = vld [vmem:[%s1463_s5 + $0x8] sm:$0xff]   ;;  %v1199_v9 = vld [vmem:[%s1463_s5 + $0x10] sm:$0xff]   ;;  %s324_s21 = scalar_lea.vmem %s1465_s7, %s993_s19 }
  0x11   : > { %1098 = vmatprep.subr.bf16.mxu1 %v1222_v2  ;;  %583 = vmatprep.mubr.bf16.mxu0 %v1349_v22  ;;  %v1187_v26 = vld [vmem:[%s306_s9] sm:$0xff]   ;;  %v1200_v10 = vld [vmem:[%s1463_s5 + $0x18] sm:$0xff]  }
  0x12   : > { %v1188_v27 = vld [vmem:[%s318_s15] sm:$0xff]  }
  0x13   : > { %1050 = vmatpush3.bf16.msra.mxu0 %v1172_v11  ;;  %v1197_v7 = vld [vmem:[%s1463_s5] sm:$0xff]  }
  0x14   : > { %1099 = vmatpush3.bf16.msra.mxu1 %v1173_v12  ;;  %1051 = vmatprep.subr.bf16.mxu0 %v1174_v13  ;;  %v1201_v11 = vld [vmem:[%s1463_s5 + $0x20] sm:$0xff]   ;;  %v1202_v12 = vld [vmem:[%s1463_s5 + $0x28] sm:$0xff]   ;;  %v1203_v13 = vld [vmem:[%s1463_s5 + $0x30] sm:$0xff]  }
  0x15   : > { %1100 = vmatprep.subr.bf16.mxu1 %v1222_v2 }
  0x17   : > { %1052 = vmatpush3.bf16.msra.mxu0 %v1175_v14  ;;  %v1204_v14 = vld [vmem:[%s1463_s5 + $0x38] sm:$0xff]  }
  0x18   : > { %1101 = vmatpush3.bf16.msra.mxu1 %v1176_v15  ;;  %1053 = vmatprep.subr.bf16.mxu0 %v1177_v16  ;;  %v1022_v15 = vld [vmem:[%s1464_s6 + $0x1] ss:$0 sm:$0xff] }
  0x19   : > { %1102 = vmatprep.subr.bf16.mxu1 %v1222_v2 }
  0x1b   : > { %1054 = vmatpush3.bf16.msra.mxu0 %v1178_v17 }
  0x1c   : > { %1103 = vmatpush3.bf16.msra.mxu1 %v1179_v18  ;;  %1055 = vmatprep.subr.bf16.mxu0 %v1180_v19 }
  0x1d   : > { %1104 = vmatprep.subr.bf16.mxu1 %v1222_v2 }
  0x1f   : > { %1056 = vmatpush3.bf16.msra.mxu0 %v1181_v20 }
  0x20   : > { %1105 = vmatpush3.bf16.msra.mxu1 %v1182_v21  ;;  %1057 = vmatprep.subr.bf16.mxu0 %v1183_v23 }
  0x21   : > { %1106 = vmatprep.subr.bf16.mxu1 %v1222_v2 }
  0x23   : > { %1058 = vmatpush3.bf16.msra.mxu0 %v1184_v24 }
  0x24   : > { %1107 = vmatpush3.bf16.msra.mxu1 %v1186_v25  ;;  %1112 = vmatprep.subr.bf16.mxu0 %v1222_v2 }
  0x25   : > { %1132 = vmatprep.subr.bf16.mxu1 %v1222_v2 }
  0x26   : > { %584 = vmatmul.mubr.bf16.vlgmr.msra.gmra.mrb[0].mxu0 %v1187_v26 }
  0x27   : > { %1109 = vmatmul.mubr.bf16.vlgmr.msra.gmra.mrb[0].mxu1 %v1188_v27  ;;  %1128 = vmatprep.mubr.msk.bf16.mxu0 %vm1223_vm0, %v1222_v2 }
  0x28   : > { %1148 = vmatprep.mubr.msk.bf16.mxu1 %vm1223_vm0, %v1222_v2  ;;  %1113 = vmatpush3.bf16.msra.mxu0 %v1189_v28 }
  0x29   : > { %1114 = vmatprep.subr.bf16.mxu0 %v1222_v2  ;;  %1133 = vmatpush3.bf16.msra.mxu1 %v1197_v7 }
  0x2a   : > { %1134 = vmatprep.subr.bf16.mxu1 %v1222_v2 }
  0x2c   : > { %1115 = vmatpush3.bf16.msra.mxu0 %v1190_v29 }
  0x2d   : > { %1116 = vmatprep.subr.bf16.mxu0 %v1222_v2  ;;  %1135 = vmatpush3.bf16.msra.mxu1 %v1198_v8 }
  0x2e   : > { %1136 = vmatprep.subr.bf16.mxu1 %v1222_v2 }
  0x30   : > { %1117 = vmatpush3.bf16.msra.mxu0 %v1191_v30 }
  0x31   : > { %1118 = vmatprep.subr.bf16.mxu0 %v1222_v2  ;;  %1137 = vmatpush3.bf16.msra.mxu1 %v1199_v9 }
  0x32   : > { %1138 = vmatprep.subr.bf16.mxu1 %v1222_v2 }
  0x34   : > { %1119 = vmatpush3.bf16.msra.mxu0 %v1192_v31 }
  0x35   : > { %1120 = vmatprep.subr.bf16.mxu0 %v1222_v2  ;;  %1139 = vmatpush3.bf16.msra.mxu1 %v1200_v10 }
  0x36   : > { %1140 = vmatprep.subr.bf16.mxu1 %v1222_v2 }
  0x38   : > { %1121 = vmatpush3.bf16.msra.mxu0 %v1193_v32 }
  0x39   : > { %1122 = vmatprep.subr.bf16.mxu0 %v1222_v2  ;;  %1141 = vmatpush3.bf16.msra.mxu1 %v1201_v11 }
  0x3a   : > { %1142 = vmatprep.subr.bf16.mxu1 %v1222_v2 }
  0x3c   : > { %1123 = vmatpush3.bf16.msra.mxu0 %v1194_v33 }
  0x3d   : > { %1124 = vmatprep.subr.bf16.mxu0 %v1222_v2  ;;  %1143 = vmatpush3.bf16.msra.mxu1 %v1202_v12 }
  0x3e   : > { %1144 = vmatprep.subr.bf16.mxu1 %v1222_v2 }
  0x40   : > { %1125 = vmatpush3.bf16.msra.mxu0 %v1195_v34 }
  0x41   : > { %1126 = vmatprep.subr.bf16.mxu0 %v1222_v2  ;;  %1145 = vmatpush3.bf16.msra.mxu1 %v1203_v13 }
  0x42   : > { %1146 = vmatprep.subr.bf16.mxu1 %v1222_v2 }
  0x44   : > { %1127 = vmatpush3.bf16.msra.mxu0 %v1196_v35 }
  0x45   : > { %1147 = vmatpush3.bf16.msra.mxu1 %v1204_v14 }
  0xf9   : > { %v1059_v36 = vpop.f32.mrb[0].mxu0 }
  0xfa   : > { %v1060_v37 = vpop.f32.mrb[1].mxu0  ;;  %v626_v39 = vpop.f32.mrb[0].mxu1 }
  0xfb   : > { %v1061_v40 = vadd.f32 %v1060_v37, %v1059_v36  ;;  %v1062_v41 = vpop.f32.mrb[2].mxu0  ;;  %v1110_v42 = vpop.f32.mrb[1].mxu1 }
  0xfc   : > { %v1063_v43 = vpop.f32.mrb[3].mxu0  ;;  %v629_v44 = vpop.f32.mrb[2].mxu1  ;;  %v1040_v42 = vld [vmem:[%s1464_s6 + $0x3] ss:$0 sm:$0xff] }
  0xfd   : > { %v586_v45 = vadd.f32 %v1061_v40, %v997_v38  ;;  %v1064_v46 = vadd.f32 %v1063_v43, %v1062_v41  ;;  %v1111_v47 = vpop.f32.mrb[3].mxu1  ;;  %v889_v41 = vunpack.c.l.bf16 %v1349_v22  ;;  %v890_v43 = vunpack.c.h.bf16 %v1349_v22 }
  0xff   : > { %v627_v48 = vadd.f32 %v626_v39, %v586_v45  ;;  %v589_v49 = vadd.f32 %v1064_v46, %v997_v38  ;;  %v895_v45 = vmul.f32 %v1040_v42, %v889_v41  ;;  %v896_v47 = vmul.f32 %v1040_v42, %v890_v43 }
 0x101   : > { %v635_v50 = vmul.f32 0.044715, %v627_v48  ;;  %v630_v51 = vadd.f32 %v629_v44, %v589_v49  ;;  %v633_v0 = vmul.f32 0.5, %v627_v48  ;;  %v1031_v44 = vld [vmem:[%s1464_s6 + $0x2] ss:$0 sm:$0xff] }
 0x103   : > { %v637_v52 = vmul.f32 %v635_v50, %v627_v48  ;;  %v636_v53 = vmul.f32 0.044715, %v630_v51  ;;  %v634_v1 = vmul.f32 0.5, %v630_v51 }
 0x105   : > { %v639_v54 = vmul.f32 %v637_v52, %v627_v48  ;;  %v638_v55 = vmul.f32 %v636_v53, %v630_v51 }
 0x107   : > { %v641_v56 = vadd.f32 %v639_v54, %v627_v48  ;;  %v640_v57 = vmul.f32 %v638_v55, %v630_v51 }
 0x109   : > { %v643_v58 = vmul.f32 0.7978846, %v641_v56  ;;  %v642_v59 = vadd.f32 %v640_v57, %v630_v51 }
 0x10b   : > { %1206 = vtanh.f32 %v643_v58  ;;  %v644_v60 = vmul.f32 0.7978846, %v642_v59 }
 0x10d   : > { %1208 = vtanh.f32 %v644_v60 }
 0x115   : > { %v1207_v61 = vpop.eup %1206 }
 0x116   : > { %v647_v62 = vadd.f32 1.0, %v1207_v61 }
 0x117   : > { %v1209_v63 = vpop.eup %1208 }
 0x118   : > { %v648_v3 = vadd.f32 1.0, %v1209_v63  ;;  %v649_v4 = vmul.f32 %v647_v62, %v633_v0 }
 0x11a   : > { %v650_v5 = vmul.f32 %v648_v3, %v634_v1 }
 0x11c   : > { %v651_v6 = vpack.c.bf16 %v650_v5, %v649_v4 }
 0x11e   : > { %1129 = vmatmul.mubr.bf16.vlgmr.msra.gmra.mrb[4].mxu0 %v651_v6 }
 0x1f1   : > { %v754_v16 = vpop.f32.mrb[4].mxu0 }
 0x1f2   : > { %v755_v17 = vadd.f32 %v1022_v15, %v754_v16  ;;  %v1130_v18 = vpop.f32.mrb[5].mxu0 }
 0x1f3   : > { %v757_v19 = vpop.f32.mrb[6].mxu0 }
 0x1f4   : > { %v763_v20 = vmul.f32 0.044715, %v755_v17  ;;  %v758_v21 = vadd.f32 %v1022_v15, %v757_v19  ;;  %v1131_v23 = vpop.f32.mrb[7].mxu0  ;;  %v761_v35 = vmul.f32 0.5, %v755_v17 }
 0x1f6   : > { %v765_v24 = vmul.f32 %v763_v20, %v755_v17  ;;  %v764_v25 = vmul.f32 0.044715, %v758_v21  ;;  %v762_v36 = vmul.f32 0.5, %v758_v21 }
 0x1f8   : > { %v767_v26 = vmul.f32 %v765_v24, %v755_v17  ;;  %v766_v27 = vmul.f32 %v764_v25, %v758_v21 }
 0x1fa   : > { %v769_v28 = vadd.f32 %v767_v26, %v755_v17  ;;  %v768_v29 = vmul.f32 %v766_v27, %v758_v21 }
 0x1fc   : > { %v771_v30 = vmul.f32 0.7978846, %v769_v28  ;;  %v770_v2 = vadd.f32 %v768_v29, %v758_v21 }
 0x1fe   : > { %1210 = vtanh.f32 %v771_v30  ;;  %v772_v31 = vmul.f32 0.7978846, %v770_v2 }
 0x200   : > { %1212 = vtanh.f32 %v772_v31 }
 0x208   : > { %v1211_v32 = vpop.eup %1210 }
 0x209   : > { %v775_v33 = vadd.f32 1.0, %v1211_v32 }
 0x20a   : > { %v1213_v34 = vpop.eup %1212 }
 0x20b   : > { %v776_v37 = vadd.f32 1.0, %v1213_v34  ;;  %v777_v38 = vmul.f32 %v775_v33, %v761_v35 }
 0x20d   : > { %v778_v39 = vmul.f32 %v776_v37, %v762_v36 }
 0x20f   : > { %v779_v40 = vpack.c.bf16 %v778_v39, %v777_v38 }
 0x211   : > { %1149 = vmatmul.mubr.bf16.vlgmr.msra.gmra.mrb[4].mxu1 %v779_v40 }
 0x2e4   : > { %v882_v46 = vpop.f32.mrb[4].mxu1 }
 0x2e5   : > { %v883_v48 = vadd.f32 %v1031_v44, %v882_v46  ;;  %v1150_v49 = vpop.f32.mrb[5].mxu1 }
 0x2e6   : > { %v885_v50 = vpop.f32.mrb[6].mxu1 }
 0x2e7   : > { %v897_v51 = vadd.f32 %v895_v45, %v883_v48  ;;  %v886_v52 = vadd.f32 %v1031_v44, %v885_v50  ;;  %v1151_v53 = vpop.f32.mrb[7].mxu1 }
 0x2e9   : > { %899 = vst [vmem:[%s324_s21] sm:$0xff] %v897_v51  ;;  %v898_v22 = vadd.f32 %v896_v47, %v886_v52 }
 0x2eb   : > { %900 = vst [vmem:[%s324_s21 + $0x8] sm:$0xff] %v898_v22 }
 0x2ec PF: > { %s17_s24 = sadd.s32 1, %s1220_s24  }
 0x2ed   : > { %p14_p4 = scmp.ge.s32.totalorder %s17_s24, 4  }
 0x2ef   :  { %16 = sbr.rel (!%p14_p4) target bundleno = 1 (0x1), region = 84 }

</bundles_post_ra>
